<compile_context>
chip_gen: v6e
topology: v6e:2x2x1
jax: 0.10.0
libtpu: 0.0.40
codegen_flags: <defaults>
</compile_context>

<pallas_src>
import functools

import jax
import jax.numpy as jnp
from jax.experimental import pallas as pl
from jax.experimental.pallas import tpu as pltpu


LANES = 128
_LANE_CANDIDATES = (16384, 8192, 4096, 2048, 1024, 512, 256, 128)  # widest-first


def _copy_kernel(x_ref, o_ref):
    # Identity copy of the current tile (pure data movement, like .view()).
    o_ref[...] = x_ref[...]


def _sublane_multiple(dtype):
    # f32 -> 8, bf16 -> 16, int8/fp8 -> 32 (sub-32-bit dtypes pack sublanes).
    itemsize = jnp.dtype(dtype).itemsize
    return max(8, 32 // itemsize)


@functools.lru_cache(maxsize=None)
def _hw_budget():
    """Generation-aware (target_block_bytes, vmem_limit_bytes).

    Pipeline footprint ~= 4x block (input + output, double-buffered), so keep
    4*block + internal scratch comfortably under physical VMEM:
      * 128 MiB VMEM chips (v5e/v6e): 16 MiB blocks, 72 MiB scoped limit
        (explicit limit matters on v5e whose default scoped VMEM is 16 MiB);
      * 64 MiB VMEM chips (v7x):       8 MiB blocks, 40 MiB scoped limit
        (faster HBM makes the ~0.35 us grid-step overhead relatively larger,
        so blocks are still big, just VMEM-safe).
    """
    try:
        vmem_cap = pltpu.get_tpu_info().vmem_capacity_bytes
    except Exception:  # pragma: no cover - conservative fallback
        vmem_cap = 64 * 1024 * 1024
    if vmem_cap >= 100 * 1024 * 1024:            # v5e / v6e class
        return 16 * 1024 * 1024, 72 * 1024 * 1024
    return 8 * 1024 * 1024, 40 * 1024 * 1024     # v7x class


def _pallas_identity_copy_2d(slab):
    """Copy a [rows, L] slab (L a multiple of 128) through a Pallas kernel."""
    rows, lanes = slab.shape
    assert lanes % LANES == 0
    itemsize = jnp.dtype(slab.dtype).itemsize
    sub = _sublane_multiple(slab.dtype)
    target_block_bytes, vmem_limit = _hw_budget()

    # Row tile sized by bytes, rounded to the dtype sublane multiple.
    tile_rows = target_block_bytes // (lanes * itemsize)
    tile_rows = max(sub, (tile_rows // sub) * sub)
    if tile_rows >= rows:
        if rows > sub:
            # Guarantee >=2 sublane-aligned grid blocks so both v7x
            # TensorCores stream (masked last block handles ragged rows).
            half = ((rows + 1) // 2 + sub - 1) // sub * sub
            tile_rows = half
        else:
            # Single block covering the whole slab (block == full array dims,
            # so no (8,128) divisibility requirement applies).
            tile_rows = rows

    grid = (pl.cdiv(rows, tile_rows),)   # masked last block handles ragged rows
    cost = pl.CostEstimate(
        flops=0, transcendentals=0,
        bytes_accessed=2 * rows * lanes * itemsize,
    )
    return pl.pallas_call(
        _copy_kernel,
        out_shape=jax.ShapeDtypeStruct((rows, lanes), slab.dtype),
        grid=grid,
        in_specs=[pl.BlockSpec((tile_rows, lanes), lambda i: (i, 0))],
        out_specs=pl.BlockSpec((tile_rows, lanes), lambda i: (i, 0)),
        compiler_params=pltpu.CompilerParams(
            dimension_semantics=("parallel",),
            vmem_limit_bytes=vmem_limit,
        ),
        cost_estimate=cost,
    )(slab)


def _pallas_identity_copy_1d(flat):
    """Single masked pass over a 1-D array whose length is NOT a multiple of
    128 (ragged element counts).  One HBM read + one HBM write, no pad/trim."""
    n = flat.shape[0]
    itemsize = jnp.dtype(flat.dtype).itemsize
    target_block_bytes, vmem_limit = _hw_budget()

    # Keep 1-D blocks modest (1-D tiles may be laid out sublane-sparse in
    # VMEM), and never larger than the padded array itself.
    block = max(LANES, (target_block_bytes // (16 * itemsize)) // LANES * LANES)
    block = min(block, ((n + LANES - 1) // LANES) * LANES)

    grid = (pl.cdiv(n, block),)          # masked last block handles the tail
    cost = pl.CostEstimate(
        flops=0, transcendentals=0, bytes_accessed=2 * n * itemsize,
    )
    return pl.pallas_call(
        _copy_kernel,
        out_shape=jax.ShapeDtypeStruct((n,), flat.dtype),
        grid=grid,
        in_specs=[pl.BlockSpec((block,), lambda i: (i,))],
        out_specs=pl.BlockSpec((block,), lambda i: (i,)),
        compiler_params=pltpu.CompilerParams(
            dimension_semantics=("parallel",),
            vmem_limit_bytes=vmem_limit,
        ),
        cost_estimate=cost,
    )(flat)


def _resolve_size(size, total):
    """Resolve a possible -1 in `size`, matching torch.view semantics."""
    size = tuple(int(s) for s in size)
    if -1 in size:
        assert size.count(-1) == 1, "only one dimension can be inferred"
        known = 1
        for s in size:
            if s != -1:
                known *= s
        assert known != 0 and total % known == 0, "shape incompatible with input"
        size = tuple(total // known if s == -1 else s for s in size)
    else:
        prod = 1
        for s in size:
            prod *= s
        assert prod == total, "shape incompatible with input"
    return size


@functools.partial(jax.jit, static_argnames=("size", "copy"))
def _view_impl(x, size, copy):
    total = x.size
    if not copy or total == 0:
        return jnp.reshape(x, size)

    flat = jnp.reshape(x, (-1,))         # row-major flatten (metadata glue)
    n = flat.shape[0]

    # Widest lane dimension (multiple of 128) dividing n exactly: no padding,
    # one HBM pass, full-width unmasked stores.
    lane_width = next((c for c in _LANE_CANDIDATES if n % c == 0), None)
    if lane_width is not None:
        slab = jnp.reshape(flat, (n // lane_width, lane_width))
        out_flat = jnp.reshape(_pallas_identity_copy_2d(slab), (-1,))
    else:
        out_flat = _pallas_identity_copy_1d(flat)

    return jnp.reshape(out_flat, size)


def view_pallas(x, size, *, copy=True):
    """Equivalent of torch.Tensor.view(size) for a contiguous tensor.

    copy=False: metadata-only path (aliased jnp.reshape), the true optimum.
    copy=True : route the data through a Pallas identity-copy kernel
                (row-major element order preserved), then reshape as glue.
    """
    size = _resolve_size(size, int(x.size))
    return _view_impl(x, size=size, copy=copy)


class View:
    """Mirror of the PyTorch View module (forward = tensor.view(size))."""

    def __init__(self, size):
        self.size = size

    def __call__(self, tensor):
        return view_pallas(tensor, self.size)


if __name__ == "__main__":
    key = jax.random.PRNGKey(0)
    # layout: NCHW input, as in PyTorch.
    x = jax.random.normal(key, (2, 4, 16, 16), dtype=jnp.float32)

    # Equivalent of View((2, -1)) in the PyTorch module.
    mod = View((2, -1))
    y = jax.block_until_ready(mod(x))
    ref = jnp.reshape(x, (2, -1))
    assert y.shape == ref.shape, (y.shape, ref.shape)
    assert y.dtype == x.dtype
    assert bool(jnp.all(y == ref))

    # Ragged path (element count not a multiple of 128) -> single masked pass.
    x2 = jax.random.normal(jax.random.PRNGKey(1), (2, 3, 5, 7), dtype=jnp.float32)
    y2 = jax.block_until_ready(view_pallas(x2, (6, 35)))
    ref2 = jnp.reshape(x2, (6, 35))
    assert y2.shape == ref2.shape
    assert bool(jnp.all(y2 == ref2))

    # Mid-size tensor -> exercises the >=2-grid-block (megacore) split.
    x3 = jax.random.normal(jax.random.PRNGKey(2), (8, 4, 64, 128), dtype=jnp.float32)
    y3 = jax.block_until_ready(view_pallas(x3, (32, -1)))
    ref3 = jnp.reshape(x3, (32, -1))
    assert y3.shape == ref3.shape
    assert bool(jnp.all(y3 == ref3))

    # Zero-copy alias fast path (true torch.view semantics).
    y4 = view_pallas(x, (8, -1), copy=False)
    assert bool(jnp.all(y4 == jnp.reshape(x, (8, -1))))

    print("KERNEL_OK")
</pallas_src>

<mosaic_0001>
module attributes {stable_mosaic.version = 11 : i64} {
  func.func @_copy_kernel(%arg0: i32, %arg1: memref<1x2048xf32, #tpu.memory_space<vmem>>, %arg2: memref<1x2048xf32, #tpu.memory_space<vmem>>) attributes {dimension_semantics = [#tpu.dimension_semantics<parallel>], iteration_bounds = array<i64: 1>, scalar_prefetch = 0 : i64, scratch_operands = 0 : i64, tpu.core_type = #tpu.core_type<tc>, window_params = [{transform_indices = @transform_0, window_bounds = array<i64: 1, 2048>}, {transform_indices = @transform_1, window_bounds = array<i64: 1, 2048>}]} {
    %c0 = arith.constant 0 : index
    %c0_0 = arith.constant 0 : index
    %0 = vector.load %arg1[%c0, %c0_0] : memref<1x2048xf32, #tpu.memory_space<vmem>>, vector<1x2048xf32>
    %c0_1 = arith.constant 0 : index
    %c0_2 = arith.constant 0 : index
    %1 = vector.load %arg2[%c0_1, %c0_2] : memref<1x2048xf32, #tpu.memory_space<vmem>>, vector<1x2048xf32>
    tpu.vector_store %arg2[%c0_1, %c0_2], %0 {strides = array<i32>} : memref<1x2048xf32, #tpu.memory_space<vmem>>, vector<1x2048xf32>,
    return
  }
  func.func @transform_0(%arg0: i32) -> (i32, i32) {
    %c0_i32 = arith.constant 0 : i32
    %c0_i32_0 = arith.constant 0 : i32
    return %arg0, %c0_i32 : i32, i32
  }
  func.func @transform_1(%arg0: i32) -> (i32, i32) {
    %c0_i32 = arith.constant 0 : i32
    %c0_i32_0 = arith.constant 0 : i32
    return %arg0, %c0_i32 : i32, i32
  }
}

</mosaic_0001>

<bundles_post_ra>
// kernel: _view_impl.1
= control target key start
LH: loop header
LB: loop body
LE: loop exit
PB: predicated region body
PF: predicated region fallthrough
CT: control target
= control target key end

     0   :  { %s38_s0 = inlined_call_operand.vmem [shape: f32[1,2048], index: 0, kind: input, shape index: {}]   ;;  %s39_s1 = inlined_call_operand.vmem [shape: f32[1,2048], index: 1, kind: output, shape index: {}]  }
   0x1   :  { %v8_v0 = vld [vmem:[%s38_s0] sm:$0xff]  ;;  %v9_v1 = vld [vmem:[%s38_s0 + $0x8] sm:$0xff] }
   0x2   :  { %10 = vst [vmem:[%s39_s1] sm:$0xff] %v8_v0  ;;  %11 = vst [vmem:[%s39_s1 + $0x8] sm:$0xff] %v9_v1 }

</bundles_post_ra>
